<compile_context>
chip_gen: v6e
topology: v6e:2x2x1
jax: 0.10.0
libtpu: 0.0.40
codegen_flags: <defaults>
</compile_context>

<pallas_src>
import jax
import jax.numpy as jnp
from jax.experimental import pallas as pl
from jax.experimental.pallas import tpu as pltpu


def _wavlm_frontend_kernel(w_ref, h_ref, o_ref):
    # w_ref: (L,) f32 in SMEM   -- softmax(feature_weight), precomputed in wrapper
    # h_ref: (L, 1, T, tD)      -- hidden-state tile for current (batch, D-tile)
    # o_ref: (1, tD, T)         -- normalized features, already in (C, L) layout
    L = h_ref.shape[0]

    # Weighted sum over layers; per-tile cast keeps HBM traffic in native dtype.
    # TODO(synk): on v7x this L-deep VALU chain could move to the (idle) MXU via
    # a contraction over L, but only if Mosaic lowers it to vmatmul; kept on the
    # VPU (known-good lowering) per the review's "verify first" guidance.
    acc = w_ref[0] * h_ref[0, 0].astype(jnp.float32)            # (T, tD)
    for l in range(1, L):
        acc = acc + w_ref[l] * h_ref[l, 0].astype(jnp.float32)

    x = acc + 1e-6                                              # matches `+ 1e-06`

    # InstanceNorm1d (affine=False, track_running_stats=False): per-channel
    # stats over the time axis, biased variance, two-pass (cancellation-safe).
    mean = jnp.mean(x, axis=0, keepdims=True)                   # (1, tD)
    xc = x - mean
    var = jnp.mean(xc * xc, axis=0, keepdims=True)              # (1, tD)
    y = xc * jax.lax.rsqrt(var + 1e-5)                          # (T, tD)

    # Fold the output transpose into the kernel (rides the otherwise-idle XLU);
    # the store stays lane-dense (T on the last axis).
    o_ref[0] = jnp.transpose(y).astype(o_ref.dtype)             # (tD, T)


def _vmem_capacity_bytes():
    """Physical VMEM of the running chip (v5e/v6e: 128 MiB, v7x: 64 MiB/TC)."""
    try:
        return int(pltpu.get_tpu_info().vmem_capacity_bytes)
    except Exception:
        return 64 * 1024 * 1024          # conservative fallback (v7x per-TC)


def _tile_need_bytes(L, T, tile_d, in_itemsize, out_itemsize):
    # Double-buffered input block + double-buffered output block + f32 working
    # set inside the body (acc, per-layer cast temp, xc, y, transposed result,
    # slack for Mosaic-materialized relayouts).
    return (2 * L * T * tile_d * in_itemsize
            + 2 * T * tile_d * out_itemsize
            + 6 * T * tile_d * 4)


def _pick_tile_d(L, B, T, D, in_itemsize, out_itemsize, vmem_budget_bytes):
    cands = sorted({c for c in range(128, D + 1, 128) if D % c == 0} | {D},
                   reverse=True)
    fitting = [c for c in cands
               if _tile_need_bytes(L, T, c, in_itemsize, out_itemsize)
               <= vmem_budget_bytes]
    if not fitting:
        # TODO(synk): very long T with L=25 may not fit even tile_d=128; that
        # needs a T-chunked two-pass path (sum/sumsq accumulated in scratch,
        # then a second normalizing pass), not a silent full-D fallback.
        smallest = min(cands)
        raise ValueError(
            "wavlm_frontend: no feature tile fits the VMEM budget "
            f"({vmem_budget_bytes} B); tile_d={smallest} needs "
            f"{_tile_need_bytes(L, T, smallest, in_itemsize, out_itemsize)} B. "
            "Tile over the time axis instead.")
    # Prefer enough grid steps for DMA/compute pipelining and multi-TC sharding,
    # while keeping contiguous DMA runs long (tile_d >= 256) where possible.
    for c in fitting:                      # descending
        if B * (D // c) >= 8 and c >= 256:
            return c
    for c in fitting:
        if B * (D // c) >= 4:
            return c
    return fitting[0]                      # tiny grid: maximize DMA run length


def wavlm_frontend(hidden_states, feature_weight, *, tile_d=None,
                   out_dtype=jnp.float32):
    """hidden_states: (L, B, T, D) f32/bf16 stacked per-layer WavLM states,
    feature_weight: (L,) learnable logits.  Returns (B, D, T) features.

    For best HBM utilization stream hidden_states in bf16 (input reads are
    2L/(2L+4) of total traffic); the f32 upcast happens per tile in VMEM."""
    L, B, T, D = hidden_states.shape
    in_itemsize = jnp.dtype(hidden_states.dtype).itemsize
    out_itemsize = jnp.dtype(out_dtype).itemsize

    vmem_cap = _vmem_capacity_bytes()
    vmem_budget = int(vmem_cap * 0.60)          # tile-selection budget
    if tile_d is None:
        tile_d = _pick_tile_d(L, B, T, D, in_itemsize, out_itemsize, vmem_budget)
    assert D % tile_d == 0, (D, tile_d)

    need = _tile_need_bytes(L, T, tile_d, in_itemsize, out_itemsize)
    vmem_limit = min(vmem_cap, max(int(vmem_cap * 0.80), need + (8 << 20)))

    # Softmax over the layer axis once in the wrapper; L scalars go to SMEM.
    w = jax.nn.softmax(feature_weight.astype(jnp.float32))

    cost = pl.CostEstimate(
        flops=(2 * L + 6) * B * T * D,
        transcendentals=B * D,                               # one rsqrt / channel
        bytes_accessed=B * T * D * (L * in_itemsize + out_itemsize),
    )

    return pl.pallas_call(
        _wavlm_frontend_kernel,
        out_shape=jax.ShapeDtypeStruct((B, D, T), out_dtype),
        grid_spec=pltpu.PrefetchScalarGridSpec(
            num_scalar_prefetch=1,
            grid=(B, D // tile_d),
            in_specs=[
                pl.BlockSpec((L, 1, T, tile_d), lambda b, d, w_ref: (0, b, 0, d)),
            ],
            out_specs=pl.BlockSpec((1, tile_d, T), lambda b, d, w_ref: (b, d, 0)),
        ),
        compiler_params=pltpu.CompilerParams(
            dimension_semantics=("parallel", "parallel"),
            vmem_limit_bytes=vmem_limit,
        ),
        cost_estimate=cost,
    )(w, hidden_states)


def _reference(hidden_states, feature_weight):
    # Pure-JAX reference mirroring the PyTorch get_feat() semantics.
    w = jax.nn.softmax(feature_weight.astype(jnp.float32))[:, None, None, None]
    x = jnp.sum(w * hidden_states.astype(jnp.float32), axis=0)   # (B, T, D)
    x = jnp.transpose(x, (0, 2, 1)) + 1e-6                       # (B, D, T)
    mean = jnp.mean(x, axis=-1, keepdims=True)
    var = jnp.mean((x - mean) ** 2, axis=-1, keepdims=True)
    return (x - mean) / jnp.sqrt(var + 1e-5)


if __name__ == "__main__":
    # TODO(synk): the s3prl/WavLM backbone (torch.hub pretrained transformer) is
    # not reimplemented; its stacked per-layer hidden states are synthesized.
    # Small but lane-dense shapes (D multiple of 128, T multiple of 8) so the
    # real tiling / unmasked-store path is exercised.
    L, B, T, D = 4, 2, 128, 256   # layers, batch, frames, feature dim

    key = jax.random.PRNGKey(0)
    hidden_states = jax.random.normal(key, (L, B, T, D), dtype=jnp.float32)
    # feature_weight parameter: torch.zeros(feat_num) in __init__
    feature_weight = jnp.zeros((L,), dtype=jnp.float32)

    ref = _reference(hidden_states, feature_weight)

    # Auto tile selection (VMEM-budget + grid-step heuristic).
    out_auto = wavlm_frontend(hidden_states, feature_weight)
    # Explicit full-D tile exercises the single-D-tile path (grid = (B, 1)).
    out_full = wavlm_frontend(hidden_states, feature_weight, tile_d=D)
    # Native bf16 streaming path (cast to f32 happens per-tile inside kernel).
    hs_bf16 = hidden_states.astype(jnp.bfloat16)
    out_bf16 = wavlm_frontend(hs_bf16, feature_weight, tile_d=128)
    # bf16 output path (halves writeback + the output double-buffer).
    out_bf16_io = wavlm_frontend(hs_bf16, feature_weight, tile_d=128,
                                 out_dtype=jnp.bfloat16)
    jax.block_until_ready((out_auto, out_full, out_bf16, out_bf16_io))

    assert out_auto.shape == (B, D, T), out_auto.shape
    assert jnp.allclose(out_auto, ref, atol=1e-4, rtol=1e-4), "auto-tile mismatch"
    assert jnp.allclose(out_full, ref, atol=1e-4, rtol=1e-4), "full-D mismatch"
    ref_bf16 = _reference(hs_bf16, feature_weight)
    assert jnp.allclose(out_bf16, ref_bf16, atol=1e-3, rtol=1e-3), "bf16-in mismatch"
    assert jnp.allclose(out_bf16_io.astype(jnp.float32), ref_bf16,
                        atol=2e-2, rtol=2e-2), "bf16-out mismatch"

    print("KERNEL_OK")
</pallas_src>

<mosaic_0001>
module attributes {stable_mosaic.version = 11 : i64} {
  func.func @_wavlm_frontend_kernel(%arg0: i32, %arg1: i32, %arg2: memref<4xf32, #tpu.memory_space<smem>>, %arg3: memref<4x1x128x128xf32, #tpu.memory_space<vmem>>, %arg4: memref<1x128x128xf32, #tpu.memory_space<vmem>>) attributes {dimension_semantics = [#tpu.dimension_semantics<parallel>, #tpu.dimension_semantics<parallel>], iteration_bounds = array<i64: 2, 2>, scalar_prefetch = 1 : i64, scratch_operands = 0 : i64, tpu.core_type = #tpu.core_type<tc>, window_params = [{transform_indices = @transform_0, window_bounds = array<i64: 4, 1, 128, 128>}, {transform_indices = @transform_1, window_bounds = array<i64: 1, 128, 128>}]} {
    %c0 = arith.constant 0 : index
    %0 = memref.load %arg2[%c0] : memref<4xf32, #tpu.memory_space<smem>>
    %c0_0 = arith.constant 0 : index
    %c0_1 = arith.constant 0 : index
    %c0_2 = arith.constant 0 : index
    %c0_3 = arith.constant 0 : index
    %1 = vector.load %arg3[%c0_0, %c0_1, %c0_2, %c0_3] : memref<4x1x128x128xf32, #tpu.memory_space<vmem>>, vector<1x1x128x128xf32>
    %2 = vector.shape_cast %1 : vector<1x1x128x128xf32> to vector<128x128xf32>
    %3 = vector.broadcast %0 : f32 to vector<128x128xf32>
    %4 = arith.mulf %3, %2 : vector<128x128xf32>
    %c1 = arith.constant 1 : index
    %5 = memref.load %arg2[%c1] : memref<4xf32, #tpu.memory_space<smem>>
    %c1_4 = arith.constant 1 : index
    %c0_5 = arith.constant 0 : index
    %c0_6 = arith.constant 0 : index
    %c0_7 = arith.constant 0 : index
    %6 = vector.load %arg3[%c1_4, %c0_5, %c0_6, %c0_7] : memref<4x1x128x128xf32, #tpu.memory_space<vmem>>, vector<1x1x128x128xf32>
    %7 = vector.shape_cast %6 : vector<1x1x128x128xf32> to vector<128x128xf32>
    %8 = vector.broadcast %5 : f32 to vector<128x128xf32>
    %9 = arith.mulf %8, %7 : vector<128x128xf32>
    %10 = arith.addf %4, %9 : vector<128x128xf32>
    %c2 = arith.constant 2 : index
    %11 = memref.load %arg2[%c2] : memref<4xf32, #tpu.memory_space<smem>>
    %c2_8 = arith.constant 2 : index
    %c0_9 = arith.constant 0 : index
    %c0_10 = arith.constant 0 : index
    %c0_11 = arith.constant 0 : index
    %12 = vector.load %arg3[%c2_8, %c0_9, %c0_10, %c0_11] : memref<4x1x128x128xf32, #tpu.memory_space<vmem>>, vector<1x1x128x128xf32>
    %13 = vector.shape_cast %12 : vector<1x1x128x128xf32> to vector<128x128xf32>
    %14 = vector.broadcast %11 : f32 to vector<128x128xf32>
    %15 = arith.mulf %14, %13 : vector<128x128xf32>
    %16 = arith.addf %10, %15 : vector<128x128xf32>
    %c3 = arith.constant 3 : index
    %17 = memref.load %arg2[%c3] : memref<4xf32, #tpu.memory_space<smem>>
    %c3_12 = arith.constant 3 : index
    %c0_13 = arith.constant 0 : index
    %c0_14 = arith.constant 0 : index
    %c0_15 = arith.constant 0 : index
    %18 = vector.load %arg3[%c3_12, %c0_13, %c0_14, %c0_15] : memref<4x1x128x128xf32, #tpu.memory_space<vmem>>, vector<1x1x128x128xf32>
    %19 = vector.shape_cast %18 : vector<1x1x128x128xf32> to vector<128x128xf32>
    %20 = vector.broadcast %17 : f32 to vector<128x128xf32>
    %21 = arith.mulf %20, %19 : vector<128x128xf32>
    %22 = arith.addf %16, %21 : vector<128x128xf32>
    %cst = arith.constant 9.99999997E-7 : f32
    %23 = vector.broadcast %cst : f32 to vector<128x128xf32>
    %24 = arith.addf %22, %23 : vector<128x128xf32>
    %cst_16 = arith.constant dense<0.000000e+00> : vector<128xf32>
    %25 = vector.multi_reduction <add>, %24, %cst_16 [0] : vector<128x128xf32> to vector<128xf32>
    %26 = vector.shape_cast %25 : vector<128xf32> to vector<1x128xf32>
    %cst_17 = arith.constant 1.280000e+02 : f32
    %27 = vector.broadcast %cst_17 : f32 to vector<1x128xf32>
    %28 = arith.divf %26, %27 : vector<1x128xf32>
    %29 = vector.broadcast %28 : vector<1x128xf32> to vector<128x128xf32>
    %30 = arith.subf %24, %29 : vector<128x128xf32>
    %31 = arith.mulf %30, %30 : vector<128x128xf32>
    %cst_18 = arith.constant dense<0.000000e+00> : vector<128xf32>
    %32 = vector.multi_reduction <add>, %31, %cst_18 [0] : vector<128x128xf32> to vector<128xf32>
    %33 = vector.shape_cast %32 : vector<128xf32> to vector<1x128xf32>
    %cst_19 = arith.constant 1.280000e+02 : f32
    %34 = vector.broadcast %cst_19 : f32 to vector<1x128xf32>
    %35 = arith.divf %33, %34 : vector<1x128xf32>
    %cst_20 = arith.constant 9.99999974E-6 : f32
    %36 = vector.broadcast %cst_20 : f32 to vector<1x128xf32>
    %37 = arith.addf %35, %36 : vector<1x128xf32>
    %38 = math.rsqrt %37 : vector<1x128xf32>
    %39 = vector.broadcast %38 : vector<1x128xf32> to vector<128x128xf32>
    %40 = arith.mulf %30, %39 : vector<128x128xf32>
    %41 = tpu.transpose %40, [1, 0] : vector<128x128xf32> -> vector<128x128xf32>
    %c0_21 = arith.constant 0 : index
    %c0_22 = arith.constant 0 : index
    %c0_23 = arith.constant 0 : index
    %42 = vector.load %arg4[%c0_21, %c0_22, %c0_23] : memref<1x128x128xf32, #tpu.memory_space<vmem>>, vector<1x128x128xf32>
    %43 = vector.shape_cast %42 : vector<1x128x128xf32> to vector<128x128xf32>
    %44 = vector.shape_cast %41 : vector<128x128xf32> to vector<1x128x128xf32>
    tpu.vector_store %arg4[%c0_21, %c0_22, %c0_23], %44 {strides = array<i32>} : memref<1x128x128xf32, #tpu.memory_space<vmem>>, vector<1x128x128xf32>,
    return
  }
  func.func @transform_0(%arg0: i32, %arg1: i32, %arg2: memref<4xf32, #tpu.memory_space<smem>>) -> (i32, i32, i32, i32) {
    %c0_i32 = arith.constant 0 : i32
    %c0_i32_0 = arith.constant 0 : i32
    %c0_i32_1 = arith.constant 0 : i32
    return %c0_i32, %arg0, %c0_i32_0, %arg1 : i32, i32, i32, i32
  }
  func.func @transform_1(%arg0: i32, %arg1: i32, %arg2: memref<4xf32, #tpu.memory_space<smem>>) -> (i32, i32, i32) {
    %c0_i32 = arith.constant 0 : i32
    %c0_i32_0 = arith.constant 0 : i32
    return %arg0, %arg1, %c0_i32 : i32, i32, i32
  }
}

</mosaic_0001>

<bundles_post_ra>
// kernel: tpu_custom_call.1
= control target key start
LH: loop header
LB: loop body
LE: loop exit
PB: predicated region body
PF: predicated region fallthrough
CT: control target
= control target key end

     0   :  { %s903_s9 = smov [#allocation3]   ;;  %s1322_s0 = inlined_call_operand.hbm [shape: f32[4], index: 0, kind: input, shape index: {}]   ;;  %s1323_s1 = inlined_call_operand.hbm [shape: f32[4,2,128,256], index: 1, kind: input, shape index: {}]   ;;  %s1324_s2 = inlined_call_operand.hbm [shape: f32[2,256,128], index: 2, kind: output, shape index: {}]  }
   0x1   :  { %8 = dma.hbm_to_smem %s1322_s0, 16, %s903_s9, [#allocation2] }
   0x2   :  { %861 = dma.done.wait [#allocation2], 16 }
   0x3   :  { %862 = vsyncadd [#allocation2], 4294967280 }
   0x4   :  { %10 = sfence }
   0x5   :  { %11 = vsyncpa [#allocation5], 0 }
   0x6   :  { %13 = vsyncpa [#allocation5 + $0x1], 0 }
   0x7   :  { %14 = vsyncpa [#allocation6], 0 }
   0x8   :  { %16 = vsyncpa [#allocation6 + $0x1], 0  ;;  %s932_s12 = smov 0   ;;  %s934_s13 = smov 0  }
   0x9   :  { %s936_s14 = smov 0   ;;  %s938_s15 = smov 0  }
   0xa   :  { %s940_s16 = smov 0   ;;  %s942_s17 = smov 0  }
   0xb   :  { %s944_s0 = smov 0   ;;  %s946_s18 = smov 0  }
   0xc LB: > { %s634_s19 = sadd.s32 4294967295, %s901_s18   ;;  %s635_s20 = sadd.s32 4294967294, %s901_s18   ;;  %s901_s18 = sphi %s946_s18, %s22_s18   ;;  %s897_s0 = sphi %s944_s0, %s1335_s0   ;;  %s893_s17 = sphi %s942_s17, %s1334_s17   ;;  %s889_s16 = sphi %s940_s16, %s1333_s16   ;;  %s885_s15 = sphi %s938_s15, %s1332_s15   ;;  %s881_s14 = sphi %s936_s14, %s1331_s14   ;;  %s877_s13 = sphi %s934_s13, %s1330_s13   ;;  %s873_s12 = sphi %s932_s12, %s1329_s12  }
   0xd   : > { %s31_s21 = sadd.s32 1, %s893_s17  ;;  %s34_s22 = sadd.s32 1, %s897_s0 }
   0xe   : > { %p32_p0 = scmp.ge.s32.totalorder %s31_s21, 2  ;;  %p50_p1 = scmp.ne.s32.totalorder %s881_s14, %s877_s13 }
   0xf   : > { %p51_p2 = scmp.eq.s32.totalorder %s901_s18, 0  ;;  %p56_p5 = scmp.ne.s32.totalorder %s877_s13, %s873_s12 }
  0x10   : > { %s1337_s21 = smov (%p32_p0, %s31_s21), 0  ;;  %s1339_s22 = smov (!%p32_p0, %s34_s22), %s897_s0 }
  0x11   : > { %s39_s23 = ssub.s32 %s893_s17, %s1337_s21  ;;  %p984_p3 = por %p51_p2, %p50_p1 }
  0x12   : > { %p36_p4 = scmp.ge.s32.totalorder %s1339_s22, 2  ;;  %p57_p6 = scmp.eq.s32.totalorder %s634_s19, 0 }
  0x13   : > { %p82_p7 = scmp.eq.s32.totalorder %s634_s19, 3  ;;  %p88_p10 = scmp.eq.s32.totalorder %s635_s20, 3 }
  0x14   : > { %s1341_s22 = smov (%p36_p4, %s1339_s22), 0  ;;  %p992_p8 = por %p57_p6, %p56_p5 }
  0x15   : > { %p996_p9 = por %p82_p7, %p50_p1  ;;  %s38_s27 = ssub.s32 %s897_s0, %s1341_s22 }
  0x16   : > { %s40_s28 = sor.u32 %s39_s23, %s38_s27  ;;  %s43_s29 = sadd.s32 1, %s881_s14 }
  0x17   : > { %p41_p11 = scmp.eq.s32.totalorder %s40_s28, 0  ;;  %p1003_p12 = por %p88_p10, %p56_p5 }
  0x18   : > { %p637_p13 = scmp.ge.s32.totalorder %s901_s18, 4 }
  0x19   : > { %s1008_s3 = scalar_select %p41_p11, %s881_s14, %s43_s29  }
  0x1a   : > { %104 = sbr.rel (%p637_p13) target bundleno = 46 (0x2e), region = 16 }
  0x1f   : > { %s108_s4 = sand.u32 1, %s881_s14   ;;  %s639_s5 = sshll.u32 %s897_s0, 5 }
  0x20   : > { %s638_s6 = sshll.u32 %s108_s4, 9  ;;  %s117_s7 = sadd.s32 %s893_s17, %s639_s5 }
  0x21   : > { %s640_s8 = sshll.u32 %s117_s7, 7  ;;  %s112_s19 = scalar_lea.vmem [#allocation4], %s638_s6 }
  0x22   : > { %s119_s11 = scalar_lea.hbm %s1323_s1, %s640_s8  ;;  %s132_s20 = sshll.u32 %s112_s19, 4  ;;  %s133_s20 = int_to_ptr.vmem [resolvable:$true] %s132_s20 }
  0x23   : > { %s703_s23 = scalar_select %p984_p3, [#allocation0], [#allocation10] }
  0x24   : > { %s904_s28 = smov 8192   ;;  %s905_s29 = smov 2048  }
  0x25   : > { %s124_s27 = sld [smem:[%s703_s23]]   ;;  %s906_s5 = smov 16  }
  0x26   : > { %704 = sst [smem:[#allocation9]] (%p984_p3), %s904_s28  ;;  %s907_s7 = smov 256  }
  0x27   : > { %705 = sst [smem:[#allocation9 + $0x1]] (%p984_p3), %s905_s29  ;;  %s908_s6 = smov 128  }
  0x28   : > { %706 = sst [smem:[#allocation9 + $0x2]] (%p984_p3), %s906_s5  ;;  %s909_s9 = smov 8  }
  0x29   : > { %707 = sst [smem:[#allocation9 + $0x3]] (%p984_p3), %s907_s7  ;;  %s109_s19 = scalar_lea.sflag [#allocation5], %s108_s4 }
  0x2a   : > { %708 = sst [smem:[#allocation9 + $0x4]] (%p984_p3), %s908_s6  ;;  %s910_s23 = smov 131072  }
  0x2b   : > { %s641_s8 = sshll.u32 %s124_s27, 26  ;;  %709 = sst [smem:[#allocation9 + $0x5]] (%p984_p3), %s909_s9 }
  0x2c   : > { %s642_s10 = sadd.s32 134217728, %s641_s8 }
  0x2d   : > { %710 = dma.general (%p984_p3), %s119_s11, 8192, %s133_s20, %s109_s19, %s910_s23, [#allocation9], %s642_s10, 0  }
  0x2e PF: > { %p643_p0 = scmp.ge.s32.totalorder %s901_s18, 1  ;;  %p153_p1 = scmp.lt.s32.totalorder %s901_s18, 5 }
  0x30   : > { %p154_p2 = pnand %p643_p0, %p153_p1 }
  0x31   : > { %s1036_s28 = sand.u32 (!%p154_p2), 1, %s877_s13  }
  0x32   : > { %157 = sbr.rel (%p154_p2) target bundleno = 391 (0x187), region = 24  ;;  %s644_s27 = sshll.u32 (!%p154_p2), %s1036_s28, 9 }
  0x33   : > { %s160_s29 = scalar_lea.sflag (!%p154_p2), [#allocation5], %s1036_s28  ;;  %s1040_s5 = scalar_lea.vmem (!%p154_p2), [#allocation4], %s644_s27 }
  0x37   : > { %864 = dma.done.wait (%p992_p8), %s160_s29, 8192  }
  0x38   : > { %866 = vsyncadd (%p992_p8), %s160_s29, 4294959104  ;;  %s183_s24 = sld [smem:[#allocation3]]  ;;  %v184_v0 = vld [vmem:[%s1040_s5] sm:$0xff]  ;;  %v185_v1 = vld [vmem:[%s1040_s5 + $0x8] sm:$0xff]  ;;  %s645_s25 = sshll.u32 %s1036_s28, 7 }
  0x39   : > { %s646_s4 = sld [smem:[#allocation3 + $0x1]]  ;;  %v647_v3 = vld [vmem:[%s1040_s5 + $0x80] sm:$0xff]  ;;  %v186_v5 = vld [vmem:[%s1040_s5 + $0x10] sm:$0xff]  ;;  %v648_v6 = vld [vmem:[%s1040_s5 + $0x88] sm:$0xff]  ;;  %s1243_s7 = scalar_lea.vmem [#allocation7], %s645_s25 }
  0x3a   : > { %s663_s11 = sld [smem:[#allocation3 + $0x2]]  ;;  %v649_v7 = vld [vmem:[%s1040_s5 + $0x90] sm:$0xff]  ;;  %v187_v8 = vld [vmem:[%s1040_s5 + $0x18] sm:$0xff]  ;;  %v188_v9 = vld [vmem:[%s1040_s5 + $0x20] sm:$0xff]  ;;  %s698_s6 = sshll.u32 %s885_s15, 4 }
  0x3b   : > { %s1047_s20 = sld [smem:[#allocation3 + $0x3]]  ;;  %v189_v10 = vld [vmem:[%s1040_s5 + $0x28] sm:$0xff]  ;;  %v190_v11 = vld [vmem:[%s1040_s5 + $0x30] sm:$0xff]  ;;  %v191_v12 = vld [vmem:[%s1040_s5 + $0x38] sm:$0xff]  ;;  %s699_s8 = sshll.u32 %s889_s16, 5 }
  0x3c   : > { %v650_v15 = vld [vmem:[%s1040_s5 + $0x98] sm:$0xff]  ;;  %v651_v18 = vld [vmem:[%s1040_s5 + $0xa0] sm:$0xff]  ;;  %v665_v26 = vld [vmem:[%s1040_s5 + $0x108] sm:$0xff]  ;;  %s542_s9 = sadd.s32 %s699_s8, %s698_s6  ;;  %s545_s19 = sshll.u32 %s1243_s7, 4  ;;  %s1268_s19 = int_to_ptr.vmem [resolvable:$true] %s545_s19 }
  0x3d   : > { %v664_v21 = vld [vmem:[%s1040_s5 + $0x100] sm:$0xff]  ;;  %v666_v27 = vld [vmem:[%s1040_s5 + $0x110] sm:$0xff]  ;;  %v193_v28 = vld [vmem:[%s1040_s5 + $0x48] sm:$0xff]  ;;  %s700_s10 = sshll.u32 %s542_s9, 7  ;;  %s530_s15 = scalar_lea.sflag [#allocation6], %s1036_s28 }
  0x3e   : > { %v1050_v2 = vstv %s183_s24  ;;  %v192_v23 = vld [vmem:[%s1040_s5 + $0x40] sm:$0xff]  ;;  %v194_v29 = vld [vmem:[%s1040_s5 + $0x50] sm:$0xff]  ;;  %v195_v30 = vld [vmem:[%s1040_s5 + $0x58] sm:$0xff]  ;;  %s1266_s29 = scalar_lea.hbm %s1324_s2, %s700_s10  ;;  %s803_s16 = scalar_lea.vmem %s1268_s19, 2048 }
  0x3f   : > { %v1053_v4 = vstv %s646_s4  ;;  %v201_v13 = vmul.f32 %v1050_v2, %v184_v0  ;;  %v202_v14 = vmul.f32 %v1050_v2, %v185_v1  ;;  %v203_v17 = vmul.f32 %v1050_v2, %v186_v5  ;;  %v652_v35 = vld [vmem:[%s1040_s5 + $0xa8] sm:$0xff]  ;;  %v653_v36 = vld [vmem:[%s1040_s5 + $0xb0] sm:$0xff]  ;;  %v667_v39 = vld [vmem:[%s1040_s5 + $0x118] sm:$0xff]  ;;  %p804_p3 = scmp.ne.s32.totalorder %s1268_s19, %s803_s16 }
  0x40   : > { %v236_v16 = vmul.f32 %v647_v3, %v1053_v4  ;;  %v237_v19 = vmul.f32 %v648_v6, %v1053_v4  ;;  %v238_v20 = vmul.f32 %v649_v7, %v1053_v4  ;;  %v1072_v22 = vstv %s663_s11  ;;  %v668_v44 = vld [vmem:[%s1040_s5 + $0x120] sm:$0xff]  ;;  %v682_v53 = vld [vmem:[%s1040_s5 + $0x188] sm:$0xff]  ;;  %v683_v54 = vld [vmem:[%s1040_s5 + $0x190] sm:$0xff] }
  0x41   : > { %v204_v24 = vmul.f32 %v1050_v2, %v187_v8  ;;  %v205_v25 = vmul.f32 %v1050_v2, %v188_v9  ;;  %v206_v31 = vmul.f32 %v1050_v2, %v189_v10  ;;  %v207_v32 = vmul.f32 %v1050_v2, %v190_v11  ;;  %v681_v47 = vld [vmem:[%s1040_s5 + $0x180] sm:$0xff]  ;;  %v197_v55 = vld [vmem:[%s1040_s5 + $0x68] sm:$0xff]  ;;  %v198_v56 = vld [vmem:[%s1040_s5 + $0x70] sm:$0xff]  ;;  %p805_p4 = pnand %p804_p3, %p996_p9 }
  0x42   : > { %v1085_v33 = vmul.f32 %v1050_v2, %v191_v12  ;;  %v239_v34 = vmul.f32 %v650_v15, %v1053_v4  ;;  %v240_v37 = vmul.f32 %v651_v18, %v1053_v4  ;;  %v252_v38 = vadd.f32 %v236_v16, %v201_v13  ;;  %v196_v48 = vld [vmem:[%s1040_s5 + $0x60] sm:$0xff]  ;;  %v654_v57 = vld [vmem:[%s1040_s5 + $0xb8] sm:$0xff]  ;;  %v669_v63 = vld [vmem:[%s1040_s5 + $0x128] sm:$0xff] }
  0x43   : > { %v287_v40 = vmul.f32 %v664_v21, %v1072_v22  ;;  %v1094_v41 = vstv %s1047_s20  ;;  %v253_v42 = vadd.f32 %v237_v19, %v202_v14  ;;  %v254_v43 = vadd.f32 %v238_v20, %v203_v17  ;;  %v684_v3 = vld [vmem:[%s1040_s5 + $0x198] sm:$0xff]  ;;  %v655_v6 = vld [vmem:[%s1040_s5 + $0xc0] sm:$0xff]  ;;  %v670_v7 = vld [vmem:[%s1040_s5 + $0x130] sm:$0xff]  ;;  %p806_p5 = pneg %p805_p4 }
  0x44   : > { %v288_v45 = vmul.f32 %v665_v26, %v1072_v22  ;;  %v289_v46 = vmul.f32 %v666_v27, %v1072_v22  ;;  %v209_v49 = vmul.f32 %v1050_v2, %v192_v23  ;;  %v1103_v50 = vmul.f32 %v1050_v2, %v193_v28  ;;  %v685_v16 = vld [vmem:[%s1040_s5 + $0x1a0] sm:$0xff]  ;;  %v199_v17 = vld [vmem:[%s1040_s5 + $0x78] sm:$0xff]  ;;  %v656_v18 = vld [vmem:[%s1040_s5 + $0xc8] sm:$0xff] }
  0x45   : > { %v1106_v51 = vmul.f32 %v1050_v2, %v194_v29  ;;  %v1109_v52 = vmul.f32 %v1050_v2, %v195_v30  ;;  %v241_v58 = vmul.f32 %v652_v35, %v1053_v4  ;;  %v242_v59 = vmul.f32 %v653_v36, %v1053_v4  ;;  %v671_v20 = vld [vmem:[%s1040_s5 + $0x138] sm:$0xff]  ;;  %v686_v29 = vld [vmem:[%s1040_s5 + $0x1a8] sm:$0xff] }
  0x46   : > { %v255_v60 = vadd.f32 %v239_v34, %v204_v24  ;;  %v290_v61 = vmul.f32 %v667_v39, %v1072_v22  ;;  %v256_v62 = vadd.f32 %v240_v37, %v205_v25  ;;  %v291_v0 = vmul.f32 %v668_v44, %v1072_v22  ;;  %v657_v25 = vld [vmem:[%s1040_s5 + $0xd0] sm:$0xff]  ;;  %v672_v34 = vld [vmem:[%s1040_s5 + $0x140] sm:$0xff] }
  0x47   : > { %v303_v1 = vadd.f32 %v287_v40, %v252_v38  ;;  %v338_v5 = vmul.f32 %v681_v47, %v1094_v41  ;;  %v304_v8 = vadd.f32 %v288_v45, %v253_v42  ;;  %v305_v9 = vadd.f32 %v289_v46, %v254_v43  ;;  %v687_v42 = vld [vmem:[%s1040_s5 + $0x1b0] sm:$0xff]  ;;  %v658_v43 = vld [vmem:[%s1040_s5 + $0xd8] sm:$0xff]  ;;  %v673_v45 = vld [vmem:[%s1040_s5 + $0x148] sm:$0xff] }
  0x48   : > { %v339_v10 = vmul.f32 %v682_v53, %v1094_v41  ;;  %v340_v11 = vmul.f32 %v683_v54, %v1094_v41  ;;  %v1128_v12 = vmul.f32 %v1050_v2, %v196_v48  ;;  %v1131_v13 = vmul.f32 %v1050_v2, %v197_v55  ;;  %v688_v55 = vld [vmem:[%s1040_s5 + $0x1b8] sm:$0xff] }
  0x49   : > { %v1134_v14 = vmul.f32 %v1050_v2, %v198_v56  ;;  %v243_v15 = vmul.f32 %v654_v57, %v1053_v4  ;;  %v257_v19 = vadd.f32 %v241_v58, %v206_v31  ;;  %v292_v21 = vmul.f32 %v669_v63, %v1072_v22  ;;  %v659_v56 = vld [vmem:[%s1040_s5 + $0xe0] sm:$0xff]  ;;  %v674_v57 = vld [vmem:[%s1040_s5 + $0x150] sm:$0xff] }
  0x4a   : > { %v306_v23 = vadd.f32 %v290_v61, %v255_v60  ;;  %v341_v24 = vmul.f32 %v684_v3, %v1094_v41  ;;  %v244_v26 = vmul.f32 %v655_v6, %v1053_v4  ;;  %v258_v27 = vadd.f32 %v242_v59, %v207_v32  ;;  %v660_v3 = vld [vmem:[%s1040_s5 + $0xe8] sm:$0xff] }
  0x4b   : > { %v293_v28 = vmul.f32 %v670_v7, %v1072_v22  ;;  %v354_v30 = vadd.f32 %v338_v5, %v303_v1  ;;  %v307_v35 = vadd.f32 %v291_v0, %v256_v62  ;;  %v342_v31 = vmul.f32 %v685_v16, %v1094_v41  ;;  %v689_v1 = vld [vmem:[%s1040_s5 + $0x1c0] sm:$0xff]  ;;  %v675_v5 = vld [vmem:[%s1040_s5 + $0x158] sm:$0xff]  ;;  %v690_v16 = vld [vmem:[%s1040_s5 + $0x1c8] sm:$0xff] }
  0x4c   : > { %v355_v36 = vadd.f32 %v339_v10, %v304_v8  ;;  %v356_v37 = vadd.f32 %v340_v11, %v305_v9  ;;  %v1150_v38 = vmul.f32 %v1050_v2, %v199_v17  ;;  %v245_v39 = vmul.f32 %v656_v18, %v1053_v4  ;;  %v661_v17 = vld [vmem:[%s1040_s5 + $0xf0] sm:$0xff]  ;;  %v676_v18 = vld [vmem:[%s1040_s5 + $0x160] sm:$0xff] }
  0x4d   : > { %v259_v32 = vadd.f32 %v243_v15, %v1085_v33  ;;  %v294_v40 = vmul.f32 %v671_v20, %v1072_v22  ;;  %v246_v44 = vmul.f32 %v657_v25, %v1053_v4  ;;  %v308_v46 = vadd.f32 %v292_v21, %v257_v19 }
  0x4e   : > { %v343_v47 = vmul.f32 %v686_v29, %v1094_v41  ;;  %v357_v48 = vadd.f32 %v341_v24, %v306_v23  ;;  %v260_v2 = vadd.f32 %v244_v26, %v209_v49  ;;  %v295_v53 = vmul.f32 %v672_v34, %v1072_v22  ;;  %v677_v29 = vld [vmem:[%s1040_s5 + $0x168] sm:$0xff] }
  0x4f   : > { %v309_v54 = vadd.f32 %v293_v28, %v258_v27  ;;  %v1162_v33 = vadd.f32 1e-06, %v354_v30  ;;  %v344_v58 = vmul.f32 %v687_v42, %v1094_v41  ;;  %v358_v59 = vadd.f32 %v342_v31, %v307_v35  ;;  %v691_v27 = vld [vmem:[%s1040_s5 + $0x1d0] sm:$0xff]  ;;  %v662_v28 = vld [vmem:[%s1040_s5 + $0xf8] sm:$0xff] }
  0x50   : > { %v1167_v60 = vadd.f32 1e-06, %v355_v36  ;;  %v1169_v61 = vadd.f32 1e-06, %v356_v37  ;;  %v247_v49 = vmul.f32 %v658_v43, %v1053_v4  ;;  %v261_v62 = vadd.f32 %v245_v39, %v1103_v50 }
  0x51   : > { %v296_v63 = vmul.f32 %v673_v45, %v1072_v22  ;;  %v310_v0 = vadd.f32 %v294_v40, %v259_v32  ;;  %v345_v6 = vmul.f32 %v688_v55, %v1094_v41  ;;  %v359_v7 = vadd.f32 %v343_v47, %v308_v46  ;;  %v692_v32 = vld [vmem:[%s1040_s5 + $0x1d8] sm:$0xff]  ;;  %v678_v40 = vld [vmem:[%s1040_s5 + $0x170] sm:$0xff] }
  0x52   : > { %v1178_v8 = vadd.f32 1e-06, %v357_v48  ;;  %v386_v9 = vadd.f32 %v1167_v60, %v1162_v33  ;;  %v248_v10 = vmul.f32 %v659_v56, %v1053_v4  ;;  %v262_v50 = vadd.f32 %v246_v44, %v1106_v51 }
  0x53   : > { %v297_v11 = vmul.f32 %v674_v57, %v1072_v22  ;;  %v311_v15 = vadd.f32 %v295_v53, %v260_v2  ;;  %v346_v19 = vmul.f32 %v689_v1, %v1094_v41  ;;  %v360_v20 = vadd.f32 %v344_v58, %v309_v54  ;;  %v693_v2 = vld [vmem:[%s1040_s5 + $0x1e0] sm:$0xff]  ;;  %v679_v53 = vld [vmem:[%s1040_s5 + $0x178] sm:$0xff] }
  0x54   : > { %v1189_v21 = vadd.f32 1e-06, %v358_v59  ;;  %v387_v23 = vadd.f32 %v386_v9, %v1169_v61  ;;  %v249_v24 = vmul.f32 %v660_v3, %v1053_v4  ;;  %v263_v51 = vadd.f32 %v247_v49, %v1109_v52  ;;  %v694_v49 = vld [vmem:[%s1040_s5 + $0x1e8] sm:$0xff] }
  0x55   : > { %v298_v25 = vmul.f32 %v675_v5, %v1072_v22  ;;  %v312_v26 = vadd.f32 %v296_v63, %v261_v62  ;;  %v347_v30 = vmul.f32 %v690_v16, %v1094_v41  ;;  %v361_v34 = vadd.f32 %v345_v6, %v310_v0  ;;  %v695_v6 = vld [vmem:[%s1040_s5 + $0x1f0] sm:$0xff] }
  0x56   : > { %v1199_v35 = vadd.f32 1e-06, %v359_v7  ;;  %v388_v31 = vadd.f32 %v387_v23, %v1178_v8  ;;  %v250_v36 = vmul.f32 %v661_v17, %v1053_v4  ;;  %v264_v37 = vadd.f32 %v248_v10, %v1128_v12 }
  0x57   : > { %v299_v52 = vmul.f32 %v676_v18, %v1072_v22  ;;  %v313_v39 = vadd.f32 %v297_v11, %v262_v50  ;;  %v348_v42 = vmul.f32 %v691_v27, %v1094_v41  ;;  %v362_v43 = vadd.f32 %v346_v19, %v311_v15  ;;  %v696_v11 = vld [vmem:[%s1040_s5 + $0x1f8] sm:$0xff]  ;;  %s911_s5 = smov [#allocation7]  }
  0x58   : > { %v1208_v44 = vadd.f32 1e-06, %v360_v20  ;;  %v389_v45 = vadd.f32 %v388_v31, %v1189_v21  ;;  %v251_v46 = vmul.f32 %v662_v28, %v1053_v4  ;;  %v265_v47 = vadd.f32 %v249_v24, %v1131_v13  ;;  %s807_s24 = sshll.u32 %s911_s5, 4  ;;  %s808_s24 = int_to_ptr.vmem [resolvable:$false] %s807_s24 }
  0x59   : > { %v300_v48 = vmul.f32 %v677_v29, %v1072_v22  ;;  %v314_v12 = vadd.f32 %v298_v25, %v263_v51  ;;  %v349_v54 = vmul.f32 %v692_v32, %v1094_v41  ;;  %v363_v55 = vadd.f32 %v347_v30, %v312_v26  ;;  %s809_s4 = scalar_lea.vmem %s808_s24, 4096  ;;  %p810_p6 = scmp.lt.s32.totalorder %s1268_s19, %s808_s24 }
  0x5a   : > { %v377_v56 = vadd.f32 1e-06, %v361_v34  ;;  %v390_v57 = vadd.f32 %v389_v45, %v1199_v35  ;;  %v266_v58 = vadd.f32 %v250_v36, %v1134_v14  ;;  %v301_v59 = vmul.f32 %v678_v40, %v1072_v22  ;;  %p811_p7 = scmp.lt.s32.totalorder %s809_s4, %s803_s16 }
  0x5b   : > { %v315_v4 = vadd.f32 %v299_v52, %v264_v37  ;;  %v350_v13 = vmul.f32 %v693_v2, %v1094_v41  ;;  %v364_v62 = vadd.f32 %v348_v42, %v313_v39  ;;  %v378_v63 = vadd.f32 1e-06, %v362_v43 }
  0x5c   : > { %v391_v0 = vadd.f32 %v390_v57, %v1208_v44  ;;  %v267_v1 = vadd.f32 %v251_v46, %v1150_v38  ;;  %v302_v3 = vmul.f32 %v679_v53, %v1072_v22  ;;  %v316_v5 = vadd.f32 %v300_v48, %v265_v47  ;;  %p812_p8 = por %p811_p7, %p810_p6 }
  0x5d   : > { %v351_v7 = vmul.f32 %v694_v49, %v1094_v41  ;;  %v365_v14 = vadd.f32 %v349_v54, %v314_v12  ;;  %v379_v9 = vadd.f32 1e-06, %v363_v55  ;;  %v317_v50 = vadd.f32 %v301_v59, %v266_v58 }
  0x5e   : > { %v392_v10 = vadd.f32 %v391_v0, %v377_v56  ;;  %v352_v15 = vmul.f32 %v695_v6, %v1094_v41  ;;  %v366_v16 = vadd.f32 %v350_v13, %v315_v4  ;;  %v380_v17 = vadd.f32 1e-06, %v364_v62  ;;  %p813_p10 = pnand %p812_p8, %p806_p5 }
  0x5f   : > { %v318_v19 = vadd.f32 %v302_v3, %v267_v1  ;;  %v353_v20 = vmul.f32 %v696_v11, %v1094_v41  ;;  %v367_v38 = vadd.f32 %v351_v7, %v316_v5  ;;  %v381_v23 = vadd.f32 1e-06, %v365_v14 }
  0x60   : > { %v393_v18 = vadd.f32 %v392_v10, %v378_v63  ;;  %v368_v24 = vadd.f32 %v352_v15, %v317_v50  ;;  %v382_v51 = vadd.f32 1e-06, %v366_v16 }
  0x61   : > { %v369_v26 = vadd.f32 %v353_v20, %v318_v19  ;;  %v383_v27 = vadd.f32 1e-06, %v367_v38 }
  0x62   : > { %v394_v22 = vadd.f32 %v393_v18, %v379_v9  ;;  %v384_v29 = vadd.f32 1e-06, %v368_v24 }
  0x63   : > { %v385_v34 = vadd.f32 1e-06, %v369_v26 }
  0x64   : > { %v395_v25 = vadd.f32 %v394_v22, %v380_v17 }
  0x66   : > { %v396_v28 = vadd.f32 %v395_v25, %v381_v23 }
  0x68   : > { %v397_v30 = vadd.f32 %v396_v28, %v382_v51 }
  0x6a   : > { %v398_v31 = vadd.f32 %v397_v30, %v383_v27 }
  0x6c   : > { %v399_v36 = vadd.f32 %v398_v31, %v384_v29 }
  0x6e   : > { %v400_v37 = vadd.f32 %v399_v36, %v385_v34 }
  0x70   : > { %v401_v52 = vrot.slane %v400_v37, 4 }
  0x72   : > { %v402_v39 = vadd.f32 %v401_v52, %v400_v37 }
  0x74   : > { %v403_v32 = vrot.slane %v402_v39, 2 }
  0x76   : > { %v404_v40 = vadd.f32 %v403_v32, %v402_v39 }
  0x78   : > { %v405_v41 = vrot.slane %v404_v40, 1 }
  0x7a   : > { %v406_v42 = vadd.f32 %v405_v41, %v404_v40 }
  0x7c   : > { %v408_v43 = vmul.f32 0.0078125, %v406_v42 }
  0x7e   : > { %v409_v45 = vsub.f32 %v1162_v33, %v408_v43  ;;  %v410_v46 = vsub.f32 %v1167_v60, %v408_v43  ;;  %v411_v47 = vsub.f32 %v1169_v61, %v408_v43  ;;  %v1234_v48 = vsub.f32 %v1178_v8, %v408_v43 }
  0x7f   : > { %v413_v53 = vsub.f32 %v1189_v21, %v408_v43  ;;  %v414_v55 = vsub.f32 %v1199_v35, %v408_v43  ;;  %v415_v33 = vsub.f32 %v1208_v44, %v408_v43  ;;  %v416_v4 = vsub.f32 %v377_v56, %v408_v43 }
  0x80   : > { %v425_v12 = vmul.f32 %v409_v45, %v409_v45  ;;  %v426_v2 = vmul.f32 %v410_v46, %v410_v46  ;;  %v427_v54 = vmul.f32 %v411_v47, %v411_v47  ;;  %v428_v57 = vmul.f32 %v1234_v48, %v1234_v48 }
  0x81   : > { %v429_v59 = vmul.f32 %v413_v53, %v413_v53  ;;  %v430_v61 = vmul.f32 %v414_v55, %v414_v55  ;;  %v417_v8 = vsub.f32 %v378_v63, %v408_v43  ;;  %v431_v13 = vmul.f32 %v415_v33, %v415_v33 }
  0x82   : > { %v441_v58 = vadd.f32 %v426_v2, %v425_v12  ;;  %v418_v0 = vsub.f32 %v379_v9, %v408_v43  ;;  %v432_v1 = vmul.f32 %v416_v4, %v416_v4  ;;  %v419_v3 = vsub.f32 %v380_v17, %v408_v43 }
  0x83   : > { %v433_v5 = vmul.f32 %v417_v8, %v417_v8  ;;  %v420_v6 = vsub.f32 %v381_v23, %v408_v43  ;;  %v421_v10 = vsub.f32 %v382_v51, %v408_v43  ;;  %v422_v11 = vsub.f32 %v383_v27, %v408_v43 }
  0x84   : > { %v442_v60 = vadd.f32 %v441_v58, %v427_v54  ;;  %v434_v7 = vmul.f32 %v418_v0, %v418_v0  ;;  %v435_v50 = vmul.f32 %v419_v3, %v419_v3  ;;  %v423_v16 = vsub.f32 %v384_v29, %v408_v43 }
  0x85   : > { %v436_v15 = vmul.f32 %v420_v6, %v420_v6  ;;  %v437_v18 = vmul.f32 %v421_v10, %v421_v10  ;;  %v424_v19 = vsub.f32 %v385_v34, %v408_v43  ;;  %v438_v20 = vmul.f32 %v422_v11, %v422_v11 }
  0x86   : > { %v443_v49 = vadd.f32 %v442_v60, %v428_v57  ;;  %v439_v38 = vmul.f32 %v423_v16, %v423_v16 }
  0x87   : > { %v440_v17 = vmul.f32 %v424_v19, %v424_v19 }
  0x88   : > { %v444_v62 = vadd.f32 %v443_v49, %v429_v59 }
  0x8a   : > { %v445_v21 = vadd.f32 %v444_v62, %v430_v61 }
  0x8c   : > { %v446_v35 = vadd.f32 %v445_v21, %v431_v13 }
  0x8e   : > { %v447_v14 = vadd.f32 %v446_v35, %v432_v1 }
  0x90   : > { %v448_v44 = vadd.f32 %v447_v14, %v433_v5 }
  0x92   : > { %v449_v56 = vadd.f32 %v448_v44, %v434_v7 }
  0x94   : > { %v450_v63 = vadd.f32 %v449_v56, %v435_v50 }
  0x96   : > { %v451_v9 = vadd.f32 %v450_v63, %v436_v15 }
  0x98   : > { %v452_v22 = vadd.f32 %v451_v9, %v437_v18 }
  0x9a   : > { %v453_v24 = vadd.f32 %v452_v22, %v438_v20 }
  0x9c   : > { %v454_v25 = vadd.f32 %v453_v24, %v439_v38 }
  0x9e   : > { %v455_v23 = vadd.f32 %v454_v25, %v440_v17 }
  0xa0   : > { %v456_v26 = vrot.slane %v455_v23, 4 }
  0xa2   : > { %v457_v28 = vadd.f32 %v456_v26, %v455_v23 }
  0xa4   : > { %v458_v51 = vrot.slane %v457_v28, 2 }
  0xa6   : > { %v459_v30 = vadd.f32 %v458_v51, %v457_v28 }
  0xa8   : > { %v460_v31 = vrot.slane %v459_v30, 1 }
  0xaa   : > { %v461_v27 = vadd.f32 %v460_v31, %v459_v30 }
  0xac   : > { %v462_v36 = vmul.f32 0.0078125, %v461_v27 }
  0xae   : > { %v463_v37 = vadd.f32 1e-05, %v462_v36 }
  0xb0   : > { %793 = vrsqrt.f32 %v463_v37 }
  0xbd   : > { %v794_v29 = vpop.eup %793 }
  0xbe   : > { %v465_v52 = vmul.f32 %v794_v29, %v409_v45  ;;  %v466_v34 = vmul.f32 %v794_v29, %v410_v46  ;;  %v478_v39 = vmul.f32 %v794_v29, %v422_v11  ;;  %v479_v32 = vmul.f32 %v794_v29, %v423_v16 }
  0xbf   : > { %v480_v40 = vmul.f32 %v794_v29, %v424_v19  ;;  %v467_v41 = vmul.f32 %v794_v29, %v411_v47  ;;  %v468_v42 = vmul.f32 %v794_v29, %v1234_v48  ;;  %v469_v43 = vmul.f32 %v794_v29, %v413_v53 }
  0xc0   : > { %481 = vxpose.xlu0.b32.start [1/16] %v465_v52, 128  ;;  %v470_v12 = vmul.f32 %v794_v29, %v414_v55  ;;  %v471_v2 = vmul.f32 %v794_v29, %v415_v33  ;;  %v472_v54 = vmul.f32 %v794_v29, %v416_v4  ;;  %v473_v45 = vmul.f32 %v794_v29, %v417_v8 }
  0xc1   : > { %v474_v46 = vmul.f32 %v794_v29, %v418_v0  ;;  %v475_v57 = vmul.f32 %v794_v29, %v419_v3  ;;  %v476_v47 = vmul.f32 %v794_v29, %v420_v6  ;;  %v477_v58 = vmul.f32 %v794_v29, %v421_v10 }
  0xc4   : > { %482 = vxpose.xlu0.b32.cont [2/16] %v466_v34, 128 }
  0xc8   : > { %483 = vxpose.xlu0.b32.cont [3/16] %v467_v41, 128 }
  0xcc   : > { %484 = vxpose.xlu0.b32.cont [4/16] %v468_v42, 128 }
  0xd0   : > { %485 = vxpose.xlu0.b32.cont [5/16] %v469_v43, 128 }
  0xd4   : > { %486 = vxpose.xlu0.b32.cont [6/16] %v470_v12, 128 }
  0xd8   : > { %487 = vxpose.xlu0.b32.cont [7/16] %v471_v2, 128 }
  0xdc   : > { %488 = vxpose.xlu0.b32.cont [8/16] %v472_v54, 128 }
  0xe0   : > { %489 = vxpose.xlu0.b32.cont [9/16] %v473_v45, 128 }
  0xe4   : > { %490 = vxpose.xlu0.b32.cont [10/16] %v474_v46, 128 }
  0xe8   : > { %491 = vxpose.xlu0.b32.cont [11/16] %v475_v57, 128 }
  0xec   : > { %492 = vxpose.xlu0.b32.cont [12/16] %v476_v47, 128 }
  0xf0   : > { %493 = vxpose.xlu0.b32.cont [13/16] %v477_v58, 128 }
  0xf4   : > { %494 = vxpose.xlu0.b32.cont [14/16] %v478_v39, 128 }
  0xf8   : > { %495 = vxpose.xlu0.b32.cont [15/16] %v479_v32, 128 }
  0xfc   : > { %496 = vxpose.xlu0.b32.end [16/16] %v480_v40, 128 }
 0x13c   : > { %v497_v48 = vpop.trf.xlu0 }
 0x13d   : > { %513 = vst [vmem:[%s1243_s7] sm:$0xff] %v497_v48 }
 0x140   : > { %v498_v53 = vpop.trf.xlu0 }
 0x141   : > { %514 = vst [vmem:[%s1243_s7 + $0x8] sm:$0xff] %v498_v53 }
 0x144   : > { %v499_v55 = vpop.trf.xlu0 }
 0x145   : > { %515 = vst [vmem:[%s1243_s7 + $0x10] sm:$0xff] %v499_v55 }
 0x148   : > { %v500_v33 = vpop.trf.xlu0 }
 0x149   : > { %516 = vst [vmem:[%s1243_s7 + $0x18] sm:$0xff] %v500_v33 }
 0x14c   : > { %v501_v59 = vpop.trf.xlu0 }
 0x14d   : > { %517 = vst [vmem:[%s1243_s7 + $0x20] sm:$0xff] %v501_v59 }
 0x150   : > { %v502_v60 = vpop.trf.xlu0 }
 0x151   : > { %518 = vst [vmem:[%s1243_s7 + $0x28] sm:$0xff] %v502_v60 }
 0x154   : > { %v503_v4 = vpop.trf.xlu0 }
 0x155   : > { %519 = vst [vmem:[%s1243_s7 + $0x30] sm:$0xff] %v503_v4 }
 0x158   : > { %v504_v61 = vpop.trf.xlu0 }
 0x159   : > { %520 = vst [vmem:[%s1243_s7 + $0x38] sm:$0xff] %v504_v61 }
 0x15c   : > { %v505_v49 = vpop.trf.xlu0 }
 0x15d   : > { %521 = vst [vmem:[%s1243_s7 + $0x40] sm:$0xff] %v505_v49 }
 0x160   : > { %v506_v8 = vpop.trf.xlu0 }
 0x161   : > { %522 = vst [vmem:[%s1243_s7 + $0x48] sm:$0xff] %v506_v8 }
 0x164   : > { %v507_v13 = vpop.trf.xlu0 }
 0x165   : > { %523 = vst [vmem:[%s1243_s7 + $0x50] sm:$0xff] %v507_v13 }
 0x168   : > { %v508_v62 = vpop.trf.xlu0 }
 0x169   : > { %524 = vst [vmem:[%s1243_s7 + $0x58] sm:$0xff] %v508_v62 }
 0x16c   : > { %v509_v0 = vpop.trf.xlu0 }
 0x16d   : > { %525 = vst [vmem:[%s1243_s7 + $0x60] sm:$0xff] %v509_v0 }
 0x170   : > { %v510_v1 = vpop.trf.xlu0 }
 0x171   : > { %526 = vst [vmem:[%s1243_s7 + $0x68] sm:$0xff] %v510_v1 }
 0x174   : > { %v511_v21 = vpop.trf.xlu0 }
 0x175   : > { %527 = vst [vmem:[%s1243_s7 + $0x70] sm:$0xff] %v511_v21 }
 0x178   : > { %v512_v3 = vpop.trf.xlu0 }
 0x179   : > { %528 = vst [vmem:[%s1243_s7 + $0x78] sm:$0xff] %v512_v3 }
 0x17a   : > { %816 = shalt.err (!%p813_p10)
}
 0x17b   : > { %s817_s11 = scalar_lea.hbm %s1266_s29, 2048  ;;  %s821_s7 = scalar_lea.hbm %s1324_s2, 8192 }
 0x17c   : > { %p818_p11 = scmp.ne.s32.totalorder %s1266_s29, %s817_s11  ;;  %p822_p1 = scmp.lt.s32.totalorder %s1266_s29, %s1324_s2 }
 0x17d   : > { %p823_p2 = scmp.lt.s32.totalorder %s821_s7, %s817_s11 }
 0x17e   : > { %p819_p13 = pnand %p818_p11, %p996_p9 }
 0x17f   : > { %p824_p3 = por %p823_p2, %p822_p1 }
 0x180   : > { %p820_p0 = pneg %p819_p13 }
 0x182   : > { %p825_p4 = pnand %p824_p3, %p820_p0 }
 0x184   : > { %828 = shalt.err (!%p825_p4)
}
 0x185   : > { %s912_s9 = smov 128   ;;  %s913_s10 = smov 8  }
 0x186   : > { %712 = dma.vmem_to_hbm [thread:$0]  (%p996_p9), %s1268_s19, 2048, %s1266_s29, %s530_s15, %s912_s9, %s912_s9, %s913_s10  }
 0x187 PF: > { %p718_p5 = scmp.ge.s32.totalorder %s901_s18, 2  ;;  %s560_s23 = sand.u32 1, %s873_s12  }
 0x188   : > { %s561_s27 = scalar_lea.sflag [#allocation6], %s560_s23 }
 0x189   : > { %p715_p6 = pnand %p718_p5, %p1003_p12 }
 0x18b   : > { %p716_p7 = pneg %p715_p6 }
 0x18d   : > { %868 = dma.done.wait (%p716_p7), %s561_s27, 2048  }
 0x18e   : > { %870 = vsyncadd (%p716_p7), %s561_s27, 4294965248  ;;  %s22_s18 = sadd.s32 1, %s901_s18   ;;  %s1329_s12 = smov %s877_s13 }
 0x18f   : > { %p19_p8 = scmp.ge.s32.totalorder %s22_s18, 6   ;;  %s1330_s13 = smov %s881_s14 }
 0x190   : > { %s1331_s14 = smov %s1008_s3  ;;  %s1332_s15 = smov %s893_s17 }
 0x191   : > { %s1333_s16 = smov %s897_s0  ;;  %s1334_s17 = smov %s1337_s21 }
 0x192   : > { %s1335_s0 = smov %s1341_s22  ;;  %21 = sbr.rel (!%p19_p8) target bundleno = 12 (0xc), region = 77 }
 0x197   :  { %566 = vsyncpa [#allocation5], 1 }
 0x198   :  { %568 = vsyncpa [#allocation5 + $0x1], 1 }
 0x199   :  { %569 = vsyncpa [#allocation6], 1 }
 0x19a   :  { %571 = vsyncpa [#allocation6 + $0x1], 1 }

</bundles_post_ra>
